<compile_context>
chip_gen: v5e
topology: v5e:2x2
jax: 0.10.0
libtpu: 0.0.40
codegen_flags: <defaults>
</compile_context>

<pallas_src>
import functools

import jax
import jax.numpy as jnp
from jax.experimental import pallas as pl
from jax.experimental.pallas import tpu as pltpu  # noqa: F401  (TPU backend assumed)


# ---------------------------------------------------------------------------
# Fused GRU kernel: prologue input projections + unrolled recurrence + decode.
# Single lane-dense output slab:
#   rows [p*BP:(p+1)*BP), lanes [0:4H) = [h_{2p+1} | z_{2p} | h_{2p+2} | z_{2p+1}]
#   rows [P*BP:(P+1)*BP), lanes [0:O)  = yhat (rest zero),  P = ceil(L/2)
# ---------------------------------------------------------------------------
def gru_fused_kernel(x2d_ref, wzx_ref, whx_ref, bz_ref, bh_ref,
                     wzh_ref, whh_ref, wd_ref, bd_ref, out_ref,
                     *, length, bp, hidden, output):
    # --- Prologue: hoisted input projections for ALL timesteps at once. ----
    # Two separate (L*BP, H) results, each starting at lane 0 (no lane-offset
    # slicing inside the recurrence).  Biases folded in here.
    xz = jnp.dot(x2d_ref[...], wzx_ref[...],
                 preferred_element_type=jnp.float32) + bz_ref[...]
    xh = jnp.dot(x2d_ref[...], whx_ref[...],
                 preferred_element_type=jnp.float32) + bh_ref[...]

    wzh = wzh_ref[...]          # (H, H)  h-part of linear_z (pre-transposed)
    whh = whh_ref[...]          # (H, H)  h-part of linear_h (pre-transposed)

    num_pairs = (length + 1) // 2
    zero_hz = jnp.zeros((bp, hidden), jnp.float32)

    h = zero_hz                 # h0 = zeros (prepended to H in the wrapper)
    h_prev = zero_hz
    z_prev = zero_hz

    # --- Recurrence: fully unrolled (length is a small static constant). ---
    for l in range(length):
        # Sublane-aligned static slices (BP = 8 => starts at multiples of 8).
        px_z = xz[l * bp:(l + 1) * bp]
        px_h = xh[l * bp:(l + 1) * bp]

        pre_z = jnp.dot(h, wzh, preferred_element_type=jnp.float32) + px_z
        # sigmoid(x) == 0.5 * tanh(0.5 * x) + 0.5  -> single EUP op + FMA.
        z = 0.5 * jnp.tanh(0.5 * pre_z) + 0.5
        # Source module computes r with linear_z as well -> r == z exactly.
        r = z
        pre_h = jnp.dot(r * h, whh, preferred_element_type=jnp.float32) + px_h
        h = h + z * (jnp.tanh(pre_h) - h)   # == (1 - z) * h + z * tanh(pre_h)

        if l % 2 == 0:
            h_prev, z_prev = h, z
        else:
            p = l // 2
            # One unmasked, lane-dense (BP, 4H=128) store per pair of steps.
            out_ref[p * bp:(p + 1) * bp, :] = jnp.concatenate(
                [h_prev, z_prev, h, z], axis=1)

    if length % 2 == 1:
        # Final unpaired step: pad the second half of the row with zeros.
        out_ref[(num_pairs - 1) * bp:num_pairs * bp, :] = jnp.concatenate(
            [h, z, zero_hz, zero_hz], axis=1)

    # --- Fused decode on the final hidden state (last row-block of slab). --
    yhat = jnp.dot(h, wd_ref[...], preferred_element_type=jnp.float32) + bd_ref[...]
    out_ref[num_pairs * bp:(num_pairs + 1) * bp, :] = jnp.concatenate(
        [yhat, jnp.zeros((bp, 4 * hidden - output), jnp.float32)], axis=1)


# ---------------------------------------------------------------------------
# Wrapper-side weight prep (do once per parameter set; hoist across calls).
# ---------------------------------------------------------------------------
def prepare_gru_params(wz, bz, wh, bh, wd, bd):
    hidden = wz.shape[0]
    f32 = jnp.float32
    return dict(
        wzh=wz[:, :hidden].T.astype(f32),   # (H, H)
        whh=wh[:, :hidden].T.astype(f32),   # (H, H)
        wzx=wz[:, hidden:].T.astype(f32),   # (I, H)
        whx=wh[:, hidden:].T.astype(f32),   # (I, H)
        bz=bz[None, :].astype(f32),         # (1, H)
        bh=bh[None, :].astype(f32),         # (1, H)
        wd_t=wd.T.astype(f32),              # (H, O)
        bd=bd[None, :].astype(f32),         # (1, O)
    )


def gru_forward_decode_prepared(x, params):
    """Returns (H, Z, R, yhat) matching the PyTorch forward + decode(H[-1])."""
    length, batch, input_size = x.shape
    hidden = params["wzh"].shape[0]
    output = params["wd_t"].shape[1]

    bp = max(8, -(-batch // 8) * 8)         # batch padded to a sublane group
    num_pairs = (length + 1) // 2
    rows = (num_pairs + 1) * bp             # pair blocks + one yhat block
    lanes = 4 * hidden                      # 128 for H=32 -> lane-dense

    x_pad = jnp.pad(x.astype(jnp.float32), ((0, 0), (0, bp - batch), (0, 0)))
    x2d = x_pad.reshape(length * bp, input_size)

    kernel = functools.partial(gru_fused_kernel, length=length, bp=bp,
                               hidden=hidden, output=output)
    full = lambda a: pl.BlockSpec(a.shape, lambda: (0,) * a.ndim)

    args = (x2d, params["wzx"], params["whx"], params["bz"], params["bh"],
            params["wzh"], params["whh"], params["wd_t"], params["bd"])

    slab = pl.pallas_call(
        kernel,
        out_shape=jax.ShapeDtypeStruct((rows, lanes), jnp.float32),
        in_specs=[full(a) for a in args],
        out_specs=pl.BlockSpec((rows, lanes), lambda: (0, 0)),
    )(*args)

    # --- Unpack the lane-dense slab (pure layout plumbing in the wrapper). --
    body = slab[:num_pairs * bp].reshape(num_pairs, bp, 2, 2, hidden)
    body = body[:, :batch]                               # drop padded batch rows
    body = jnp.transpose(body, (0, 2, 3, 1, 4))          # (pair, step, hz, B, H)
    body = body.reshape(2 * num_pairs, 2, batch, hidden)[:length]
    H_steps = body[:, 0]                                 # h_1 .. h_L
    Z = body[:, 1]                                       # z_0 .. z_{L-1}
    H = jnp.concatenate(
        [jnp.zeros((1, batch, hidden), jnp.float32), H_steps], axis=0)
    yhat = slab[num_pairs * bp:num_pairs * bp + batch, :output]
    R = Z   # r == z by construction (same preactivation in the source module)
    return H, Z, R, yhat


def gru_forward_decode(x, wz, bz, wh, bh, wd, bd):
    return gru_forward_decode_prepared(x, prepare_gru_params(wz, bz, wh, bh, wd, bd))


# ---------------------------------------------------------------------------
# Pure-JAX reference (mirrors the PyTorch forward exactly).
# ---------------------------------------------------------------------------
def gru_ref(x, wz, bz, wh, bh):
    length, batch, _ = x.shape
    hidden = wz.shape[0]
    h = jnp.zeros((batch, hidden), jnp.float32)
    Hs, Zs, Rs = [h], [], []
    for l in range(length):
        inp = jnp.concatenate([h, x[l]], axis=1)
        z = jax.nn.sigmoid(inp @ wz.T + bz)
        r = jax.nn.sigmoid(inp @ wz.T + bz)   # same quirk as source module
        inp2 = jnp.concatenate([r * h, x[l]], axis=1)
        h = (1 - z) * h + z * jnp.tanh(inp2 @ wh.T + bh)
        Hs.append(h); Zs.append(z); Rs.append(r)
    return jnp.stack(Hs), jnp.stack(Zs), jnp.stack(Rs)


if __name__ == "__main__":
    # Small shapes implied by the module: seq=8, batch=2, input=4, hidden=32.
    length, batch, input_size, hidden, output = 8, 2, 4, 32, 5

    key = jax.random.PRNGKey(0)
    ks = jax.random.split(key, 8)
    fan_in = input_size + hidden
    bound = 1.0 / jnp.sqrt(jnp.float32(fan_in))
    u = lambda k, shape, b: jax.random.uniform(k, shape, jnp.float32, -b, b)

    wz = u(ks[0], (hidden, fan_in), bound)
    bz = u(ks[1], (hidden,), bound)
    wh = u(ks[2], (hidden, fan_in), bound)
    bh = u(ks[3], (hidden,), bound)
    # linear_r exists in __init__ but is never used in forward (source quirk).
    wr = u(ks[4], (hidden, fan_in), bound)   # noqa: F841 (unused, like PyTorch)
    bd_bound = 1.0 / jnp.sqrt(jnp.float32(hidden))
    wd = u(ks[5], (output, hidden), bd_bound)
    bd = u(ks[6], (output,), bd_bound)

    x = jax.random.normal(ks[7], (length, batch, input_size), jnp.float32)

    # Weight prep hoisted out of the per-call path; jit only the call path.
    params = prepare_gru_params(wz, bz, wh, bh, wd, bd)
    fwd = jax.jit(gru_forward_decode_prepared)
    H, Z, R, yhat = jax.block_until_ready(fwd(x, params))

    # Correctness check against the pure-JAX reference.
    H_ref, Z_ref, R_ref = gru_ref(x, wz, bz, wh, bh)
    y_ref = H_ref[-1] @ wd.T + bd
    assert H.shape == (length + 1, batch, hidden)
    assert Z.shape == (length, batch, hidden) and R.shape == Z.shape
    assert yhat.shape == (batch, output)
    assert jnp.allclose(H, H_ref, atol=1e-5)
    assert jnp.allclose(Z, Z_ref, atol=1e-5)
    assert jnp.allclose(R, R_ref, atol=1e-5)
    assert jnp.allclose(yhat, y_ref, atol=1e-5)

    print("KERNEL_OK")
</pallas_src>

<mosaic_0001>
module attributes {stable_mosaic.version = 11 : i64} {
  func.func @gru_fused_kernel(%arg0: memref<64x4xf32, #tpu.memory_space<vmem>>, %arg1: memref<4x32xf32, #tpu.memory_space<vmem>>, %arg2: memref<4x32xf32, #tpu.memory_space<vmem>>, %arg3: memref<1x32xf32, #tpu.memory_space<vmem>>, %arg4: memref<1x32xf32, #tpu.memory_space<vmem>>, %arg5: memref<32x32xf32, #tpu.memory_space<vmem>>, %arg6: memref<32x32xf32, #tpu.memory_space<vmem>>, %arg7: memref<32x5xf32, #tpu.memory_space<vmem>>, %arg8: memref<1x5xf32, #tpu.memory_space<vmem>>, %arg9: memref<40x128xf32, #tpu.memory_space<vmem>>) attributes {dimension_semantics = [], scalar_prefetch = 0 : i64, scratch_operands = 0 : i64, tpu.core_type = #tpu.core_type<tc>} {
    %c0 = arith.constant 0 : index
    %c0_0 = arith.constant 0 : index
    %0 = vector.load %arg0[%c0, %c0_0] : memref<64x4xf32, #tpu.memory_space<vmem>>, vector<64x4xf32>
    %c0_1 = arith.constant 0 : index
    %c0_2 = arith.constant 0 : index
    %1 = vector.load %arg1[%c0_1, %c0_2] : memref<4x32xf32, #tpu.memory_space<vmem>>, vector<4x32xf32>
    %cst = arith.constant dense<0.000000e+00> : vector<64x32xf32>
    %2 = tpu.matmul %0, %1, %cst {dimension_numbers = #tpu.dot_dimension_numbers<[1], [0], [0], [1], [0, 0, 1, 1], [], []>} : vector<64x4xf32>, vector<4x32xf32>, vector<64x32xf32> -> vector<64x32xf32>
    %c0_3 = arith.constant 0 : index
    %c0_4 = arith.constant 0 : index
    %3 = vector.load %arg3[%c0_3, %c0_4] : memref<1x32xf32, #tpu.memory_space<vmem>>, vector<1x32xf32>
    %4 = vector.broadcast %3 : vector<1x32xf32> to vector<64x32xf32>
    %5 = arith.addf %2, %4 : vector<64x32xf32>
    %c0_5 = arith.constant 0 : index
    %c0_6 = arith.constant 0 : index
    %6 = vector.load %arg0[%c0_5, %c0_6] : memref<64x4xf32, #tpu.memory_space<vmem>>, vector<64x4xf32>
    %c0_7 = arith.constant 0 : index
    %c0_8 = arith.constant 0 : index
    %7 = vector.load %arg2[%c0_7, %c0_8] : memref<4x32xf32, #tpu.memory_space<vmem>>, vector<4x32xf32>
    %cst_9 = arith.constant dense<0.000000e+00> : vector<64x32xf32>
    %8 = tpu.matmul %6, %7, %cst_9 {dimension_numbers = #tpu.dot_dimension_numbers<[1], [0], [0], [1], [0, 0, 1, 1], [], []>} : vector<64x4xf32>, vector<4x32xf32>, vector<64x32xf32> -> vector<64x32xf32>
    %c0_10 = arith.constant 0 : index
    %c0_11 = arith.constant 0 : index
    %9 = vector.load %arg4[%c0_10, %c0_11] : memref<1x32xf32, #tpu.memory_space<vmem>>, vector<1x32xf32>
    %10 = vector.broadcast %9 : vector<1x32xf32> to vector<64x32xf32>
    %11 = arith.addf %8, %10 : vector<64x32xf32>
    %c0_12 = arith.constant 0 : index
    %c0_13 = arith.constant 0 : index
    %12 = vector.load %arg5[%c0_12, %c0_13] : memref<32x32xf32, #tpu.memory_space<vmem>>, vector<32x32xf32>
    %c0_14 = arith.constant 0 : index
    %c0_15 = arith.constant 0 : index
    %13 = vector.load %arg6[%c0_14, %c0_15] : memref<32x32xf32, #tpu.memory_space<vmem>>, vector<32x32xf32>
    %cst_16 = arith.constant 0.000000e+00 : f32
    %14 = vector.broadcast %cst_16 : f32 to vector<8x32xf32>
    %15 = vector.extract_strided_slice %5 {offsets = [0, 0], sizes = [8, 32], strides = [1, 1]} : vector<64x32xf32> to vector<8x32xf32>
    %16 = vector.extract_strided_slice %11 {offsets = [0, 0], sizes = [8, 32], strides = [1, 1]} : vector<64x32xf32> to vector<8x32xf32>
    %cst_17 = arith.constant dense<0.000000e+00> : vector<8x32xf32>
    %17 = tpu.matmul %14, %12, %cst_17 {dimension_numbers = #tpu.dot_dimension_numbers<[1], [0], [0], [1], [0, 0, 1, 1], [], []>} : vector<8x32xf32>, vector<32x32xf32>, vector<8x32xf32> -> vector<8x32xf32>
    %18 = arith.addf %17, %15 : vector<8x32xf32>
    %cst_18 = arith.constant 5.000000e-01 : f32
    %19 = vector.broadcast %cst_18 : f32 to vector<8x32xf32>
    %20 = arith.mulf %19, %18 : vector<8x32xf32>
    %21 = math.tanh %20 : vector<8x32xf32>
    %cst_19 = arith.constant 5.000000e-01 : f32
    %22 = vector.broadcast %cst_19 : f32 to vector<8x32xf32>
    %23 = arith.mulf %22, %21 : vector<8x32xf32>
    %cst_20 = arith.constant 5.000000e-01 : f32
    %24 = vector.broadcast %cst_20 : f32 to vector<8x32xf32>
    %25 = arith.addf %23, %24 : vector<8x32xf32>
    %26 = arith.mulf %25, %14 : vector<8x32xf32>
    %cst_21 = arith.constant dense<0.000000e+00> : vector<8x32xf32>
    %27 = tpu.matmul %26, %13, %cst_21 {dimension_numbers = #tpu.dot_dimension_numbers<[1], [0], [0], [1], [0, 0, 1, 1], [], []>} : vector<8x32xf32>, vector<32x32xf32>, vector<8x32xf32> -> vector<8x32xf32>
    %28 = arith.addf %27, %16 : vector<8x32xf32>
    %29 = math.tanh %28 : vector<8x32xf32>
    %30 = arith.subf %29, %14 : vector<8x32xf32>
    %31 = arith.mulf %25, %30 : vector<8x32xf32>
    %32 = arith.addf %14, %31 : vector<8x32xf32>
    %33 = vector.extract_strided_slice %5 {offsets = [8, 0], sizes = [8, 32], strides = [1, 1]} : vector<64x32xf32> to vector<8x32xf32>
    %34 = vector.extract_strided_slice %11 {offsets = [8, 0], sizes = [8, 32], strides = [1, 1]} : vector<64x32xf32> to vector<8x32xf32>
    %cst_22 = arith.constant dense<0.000000e+00> : vector<8x32xf32>
    %35 = tpu.matmul %32, %12, %cst_22 {dimension_numbers = #tpu.dot_dimension_numbers<[1], [0], [0], [1], [0, 0, 1, 1], [], []>} : vector<8x32xf32>, vector<32x32xf32>, vector<8x32xf32> -> vector<8x32xf32>
    %36 = arith.addf %35, %33 : vector<8x32xf32>
    %cst_23 = arith.constant 5.000000e-01 : f32
    %37 = vector.broadcast %cst_23 : f32 to vector<8x32xf32>
    %38 = arith.mulf %37, %36 : vector<8x32xf32>
    %39 = math.tanh %38 : vector<8x32xf32>
    %cst_24 = arith.constant 5.000000e-01 : f32
    %40 = vector.broadcast %cst_24 : f32 to vector<8x32xf32>
    %41 = arith.mulf %40, %39 : vector<8x32xf32>
    %cst_25 = arith.constant 5.000000e-01 : f32
    %42 = vector.broadcast %cst_25 : f32 to vector<8x32xf32>
    %43 = arith.addf %41, %42 : vector<8x32xf32>
    %44 = arith.mulf %43, %32 : vector<8x32xf32>
    %cst_26 = arith.constant dense<0.000000e+00> : vector<8x32xf32>
    %45 = tpu.matmul %44, %13, %cst_26 {dimension_numbers = #tpu.dot_dimension_numbers<[1], [0], [0], [1], [0, 0, 1, 1], [], []>} : vector<8x32xf32>, vector<32x32xf32>, vector<8x32xf32> -> vector<8x32xf32>
    %46 = arith.addf %45, %34 : vector<8x32xf32>
    %47 = math.tanh %46 : vector<8x32xf32>
    %48 = arith.subf %47, %32 : vector<8x32xf32>
    %49 = arith.mulf %43, %48 : vector<8x32xf32>
    %50 = arith.addf %32, %49 : vector<8x32xf32>
    %51 = tpu.concatenate %32, %25, %50, %43 in 1 : vector<8x32xf32>, vector<8x32xf32>, vector<8x32xf32>, vector<8x32xf32> -> vector<8x128xf32>
    %c0_27 = arith.constant 0 : index
    %c0_28 = arith.constant 0 : index
    %52 = vector.load %arg9[%c0_27, %c0_28] : memref<40x128xf32, #tpu.memory_space<vmem>>, vector<8x128xf32>
    tpu.vector_store %arg9[%c0_27, %c0_28], %51 {strides = array<i32>} : memref<40x128xf32, #tpu.memory_space<vmem>>, vector<8x128xf32>,
    %53 = vector.extract_strided_slice %5 {offsets = [16, 0], sizes = [8, 32], strides = [1, 1]} : vector<64x32xf32> to vector<8x32xf32>
    %54 = vector.extract_strided_slice %11 {offsets = [16, 0], sizes = [8, 32], strides = [1, 1]} : vector<64x32xf32> to vector<8x32xf32>
    %cst_29 = arith.constant dense<0.000000e+00> : vector<8x32xf32>
    %55 = tpu.matmul %50, %12, %cst_29 {dimension_numbers = #tpu.dot_dimension_numbers<[1], [0], [0], [1], [0, 0, 1, 1], [], []>} : vector<8x32xf32>, vector<32x32xf32>, vector<8x32xf32> -> vector<8x32xf32>
    %56 = arith.addf %55, %53 : vector<8x32xf32>
    %cst_30 = arith.constant 5.000000e-01 : f32
    %57 = vector.broadcast %cst_30 : f32 to vector<8x32xf32>
    %58 = arith.mulf %57, %56 : vector<8x32xf32>
    %59 = math.tanh %58 : vector<8x32xf32>
    %cst_31 = arith.constant 5.000000e-01 : f32
    %60 = vector.broadcast %cst_31 : f32 to vector<8x32xf32>
    %61 = arith.mulf %60, %59 : vector<8x32xf32>
    %cst_32 = arith.constant 5.000000e-01 : f32
    %62 = vector.broadcast %cst_32 : f32 to vector<8x32xf32>
    %63 = arith.addf %61, %62 : vector<8x32xf32>
    %64 = arith.mulf %63, %50 : vector<8x32xf32>
    %cst_33 = arith.constant dense<0.000000e+00> : vector<8x32xf32>
    %65 = tpu.matmul %64, %13, %cst_33 {dimension_numbers = #tpu.dot_dimension_numbers<[1], [0], [0], [1], [0, 0, 1, 1], [], []>} : vector<8x32xf32>, vector<32x32xf32>, vector<8x32xf32> -> vector<8x32xf32>
    %66 = arith.addf %65, %54 : vector<8x32xf32>
    %67 = math.tanh %66 : vector<8x32xf32>
    %68 = arith.subf %67, %50 : vector<8x32xf32>
    %69 = arith.mulf %63, %68 : vector<8x32xf32>
    %70 = arith.addf %50, %69 : vector<8x32xf32>
    %71 = vector.extract_strided_slice %5 {offsets = [24, 0], sizes = [8, 32], strides = [1, 1]} : vector<64x32xf32> to vector<8x32xf32>
    %72 = vector.extract_strided_slice %11 {offsets = [24, 0], sizes = [8, 32], strides = [1, 1]} : vector<64x32xf32> to vector<8x32xf32>
    %cst_34 = arith.constant dense<0.000000e+00> : vector<8x32xf32>
    %73 = tpu.matmul %70, %12, %cst_34 {dimension_numbers = #tpu.dot_dimension_numbers<[1], [0], [0], [1], [0, 0, 1, 1], [], []>} : vector<8x32xf32>, vector<32x32xf32>, vector<8x32xf32> -> vector<8x32xf32>
    %74 = arith.addf %73, %71 : vector<8x32xf32>
    %cst_35 = arith.constant 5.000000e-01 : f32
    %75 = vector.broadcast %cst_35 : f32 to vector<8x32xf32>
    %76 = arith.mulf %75, %74 : vector<8x32xf32>
    %77 = math.tanh %76 : vector<8x32xf32>
    %cst_36 = arith.constant 5.000000e-01 : f32
    %78 = vector.broadcast %cst_36 : f32 to vector<8x32xf32>
    %79 = arith.mulf %78, %77 : vector<8x32xf32>
    %cst_37 = arith.constant 5.000000e-01 : f32
    %80 = vector.broadcast %cst_37 : f32 to vector<8x32xf32>
    %81 = arith.addf %79, %80 : vector<8x32xf32>
    %82 = arith.mulf %81, %70 : vector<8x32xf32>
    %cst_38 = arith.constant dense<0.000000e+00> : vector<8x32xf32>
    %83 = tpu.matmul %82, %13, %cst_38 {dimension_numbers = #tpu.dot_dimension_numbers<[1], [0], [0], [1], [0, 0, 1, 1], [], []>} : vector<8x32xf32>, vector<32x32xf32>, vector<8x32xf32> -> vector<8x32xf32>
    %84 = arith.addf %83, %72 : vector<8x32xf32>
    %85 = math.tanh %84 : vector<8x32xf32>
    %86 = arith.subf %85, %70 : vector<8x32xf32>
    %87 = arith.mulf %81, %86 : vector<8x32xf32>
    %88 = arith.addf %70, %87 : vector<8x32xf32>
    %89 = tpu.concatenate %70, %63, %88, %81 in 1 : vector<8x32xf32>, vector<8x32xf32>, vector<8x32xf32>, vector<8x32xf32> -> vector<8x128xf32>
    %c8 = arith.constant 8 : index
    %c0_39 = arith.constant 0 : index
    %90 = vector.load %arg9[%c8, %c0_39] : memref<40x128xf32, #tpu.memory_space<vmem>>, vector<8x128xf32>
    tpu.vector_store %arg9[%c8, %c0_39], %89 {strides = array<i32>} : memref<40x128xf32, #tpu.memory_space<vmem>>, vector<8x128xf32>,
    %91 = vector.extract_strided_slice %5 {offsets = [32, 0], sizes = [8, 32], strides = [1, 1]} : vector<64x32xf32> to vector<8x32xf32>
    %92 = vector.extract_strided_slice %11 {offsets = [32, 0], sizes = [8, 32], strides = [1, 1]} : vector<64x32xf32> to vector<8x32xf32>
    %cst_40 = arith.constant dense<0.000000e+00> : vector<8x32xf32>
    %93 = tpu.matmul %88, %12, %cst_40 {dimension_numbers = #tpu.dot_dimension_numbers<[1], [0], [0], [1], [0, 0, 1, 1], [], []>} : vector<8x32xf32>, vector<32x32xf32>, vector<8x32xf32> -> vector<8x32xf32>
    %94 = arith.addf %93, %91 : vector<8x32xf32>
    %cst_41 = arith.constant 5.000000e-01 : f32
    %95 = vector.broadcast %cst_41 : f32 to vector<8x32xf32>
    %96 = arith.mulf %95, %94 : vector<8x32xf32>
    %97 = math.tanh %96 : vector<8x32xf32>
    %cst_42 = arith.constant 5.000000e-01 : f32
    %98 = vector.broadcast %cst_42 : f32 to vector<8x32xf32>
    %99 = arith.mulf %98, %97 : vector<8x32xf32>
    %cst_43 = arith.constant 5.000000e-01 : f32
    %100 = vector.broadcast %cst_43 : f32 to vector<8x32xf32>
    %101 = arith.addf %99, %100 : vector<8x32xf32>
    %102 = arith.mulf %101, %88 : vector<8x32xf32>
    %cst_44 = arith.constant dense<0.000000e+00> : vector<8x32xf32>
    %103 = tpu.matmul %102, %13, %cst_44 {dimension_numbers = #tpu.dot_dimension_numbers<[1], [0], [0], [1], [0, 0, 1, 1], [], []>} : vector<8x32xf32>, vector<32x32xf32>, vector<8x32xf32> -> vector<8x32xf32>
    %104 = arith.addf %103, %92 : vector<8x32xf32>
    %105 = math.tanh %104 : vector<8x32xf32>
    %106 = arith.subf %105, %88 : vector<8x32xf32>
    %107 = arith.mulf %101, %106 : vector<8x32xf32>
    %108 = arith.addf %88, %107 : vector<8x32xf32>
    %109 = vector.extract_strided_slice %5 {offsets = [40, 0], sizes = [8, 32], strides = [1, 1]} : vector<64x32xf32> to vector<8x32xf32>
    %110 = vector.extract_strided_slice %11 {offsets = [40, 0], sizes = [8, 32], strides = [1, 1]} : vector<64x32xf32> to vector<8x32xf32>
    %cst_45 = arith.constant dense<0.000000e+00> : vector<8x32xf32>
    %111 = tpu.matmul %108, %12, %cst_45 {dimension_numbers = #tpu.dot_dimension_numbers<[1], [0], [0], [1], [0, 0, 1, 1], [], []>} : vector<8x32xf32>, vector<32x32xf32>, vector<8x32xf32> -> vector<8x32xf32>
    %112 = arith.addf %111, %109 : vector<8x32xf32>
    %cst_46 = arith.constant 5.000000e-01 : f32
    %113 = vector.broadcast %cst_46 : f32 to vector<8x32xf32>
    %114 = arith.mulf %113, %112 : vector<8x32xf32>
    %115 = math.tanh %114 : vector<8x32xf32>
    %cst_47 = arith.constant 5.000000e-01 : f32
    %116 = vector.broadcast %cst_47 : f32 to vector<8x32xf32>
    %117 = arith.mulf %116, %115 : vector<8x32xf32>
    %cst_48 = arith.constant 5.000000e-01 : f32
    %118 = vector.broadcast %cst_48 : f32 to vector<8x32xf32>
    %119 = arith.addf %117, %118 : vector<8x32xf32>
    %120 = arith.mulf %119, %108 : vector<8x32xf32>
    %cst_49 = arith.constant dense<0.000000e+00> : vector<8x32xf32>
    %121 = tpu.matmul %120, %13, %cst_49 {dimension_numbers = #tpu.dot_dimension_numbers<[1], [0], [0], [1], [0, 0, 1, 1], [], []>} : vector<8x32xf32>, vector<32x32xf32>, vector<8x32xf32> -> vector<8x32xf32>
    %122 = arith.addf %121, %110 : vector<8x32xf32>
    %123 = math.tanh %122 : vector<8x32xf32>
    %124 = arith.subf %123, %108 : vector<8x32xf32>
    %125 = arith.mulf %119, %124 : vector<8x32xf32>
    %126 = arith.addf %108, %125 : vector<8x32xf32>
    %127 = tpu.concatenate %108, %101, %126, %119 in 1 : vector<8x32xf32>, vector<8x32xf32>, vector<8x32xf32>, vector<8x32xf32> -> vector<8x128xf32>
    %c16 = arith.constant 16 : index
    %c0_50 = arith.constant 0 : index
    %128 = vector.load %arg9[%c16, %c0_50] : memref<40x128xf32, #tpu.memory_space<vmem>>, vector<8x128xf32>
    tpu.vector_store %arg9[%c16, %c0_50], %127 {strides = array<i32>} : memref<40x128xf32, #tpu.memory_space<vmem>>, vector<8x128xf32>,
    %129 = vector.extract_strided_slice %5 {offsets = [48, 0], sizes = [8, 32], strides = [1, 1]} : vector<64x32xf32> to vector<8x32xf32>
    %130 = vector.extract_strided_slice %11 {offsets = [48, 0], sizes = [8, 32], strides = [1, 1]} : vector<64x32xf32> to vector<8x32xf32>
    %cst_51 = arith.constant dense<0.000000e+00> : vector<8x32xf32>
    %131 = tpu.matmul %126, %12, %cst_51 {dimension_numbers = #tpu.dot_dimension_numbers<[1], [0], [0], [1], [0, 0, 1, 1], [], []>} : vector<8x32xf32>, vector<32x32xf32>, vector<8x32xf32> -> vector<8x32xf32>
    %132 = arith.addf %131, %129 : vector<8x32xf32>
    %cst_52 = arith.constant 5.000000e-01 : f32
    %133 = vector.broadcast %cst_52 : f32 to vector<8x32xf32>
    %134 = arith.mulf %133, %132 : vector<8x32xf32>
    %135 = math.tanh %134 : vector<8x32xf32>
    %cst_53 = arith.constant 5.000000e-01 : f32
    %136 = vector.broadcast %cst_53 : f32 to vector<8x32xf32>
    %137 = arith.mulf %136, %135 : vector<8x32xf32>
    %cst_54 = arith.constant 5.000000e-01 : f32
    %138 = vector.broadcast %cst_54 : f32 to vector<8x32xf32>
    %139 = arith.addf %137, %138 : vector<8x32xf32>
    %140 = arith.mulf %139, %126 : vector<8x32xf32>
    %cst_55 = arith.constant dense<0.000000e+00> : vector<8x32xf32>
    %141 = tpu.matmul %140, %13, %cst_55 {dimension_numbers = #tpu.dot_dimension_numbers<[1], [0], [0], [1], [0, 0, 1, 1], [], []>} : vector<8x32xf32>, vector<32x32xf32>, vector<8x32xf32> -> vector<8x32xf32>
    %142 = arith.addf %141, %130 : vector<8x32xf32>
    %143 = math.tanh %142 : vector<8x32xf32>
    %144 = arith.subf %143, %126 : vector<8x32xf32>
    %145 = arith.mulf %139, %144 : vector<8x32xf32>
    %146 = arith.addf %126, %145 : vector<8x32xf32>
    %147 = vector.extract_strided_slice %5 {offsets = [56, 0], sizes = [8, 32], strides = [1, 1]} : vector<64x32xf32> to vector<8x32xf32>
    %148 = vector.extract_strided_slice %11 {offsets = [56, 0], sizes = [8, 32], strides = [1, 1]} : vector<64x32xf32> to vector<8x32xf32>
    %cst_56 = arith.constant dense<0.000000e+00> : vector<8x32xf32>
    %149 = tpu.matmul %146, %12, %cst_56 {dimension_numbers = #tpu.dot_dimension_numbers<[1], [0], [0], [1], [0, 0, 1, 1], [], []>} : vector<8x32xf32>, vector<32x32xf32>, vector<8x32xf32> -> vector<8x32xf32>
    %150 = arith.addf %149, %147 : vector<8x32xf32>
    %cst_57 = arith.constant 5.000000e-01 : f32
    %151 = vector.broadcast %cst_57 : f32 to vector<8x32xf32>
    %152 = arith.mulf %151, %150 : vector<8x32xf32>
    %153 = math.tanh %152 : vector<8x32xf32>
    %cst_58 = arith.constant 5.000000e-01 : f32
    %154 = vector.broadcast %cst_58 : f32 to vector<8x32xf32>
    %155 = arith.mulf %154, %153 : vector<8x32xf32>
    %cst_59 = arith.constant 5.000000e-01 : f32
    %156 = vector.broadcast %cst_59 : f32 to vector<8x32xf32>
    %157 = arith.addf %155, %156 : vector<8x32xf32>
    %158 = arith.mulf %157, %146 : vector<8x32xf32>
    %cst_60 = arith.constant dense<0.000000e+00> : vector<8x32xf32>
    %159 = tpu.matmul %158, %13, %cst_60 {dimension_numbers = #tpu.dot_dimension_numbers<[1], [0], [0], [1], [0, 0, 1, 1], [], []>} : vector<8x32xf32>, vector<32x32xf32>, vector<8x32xf32> -> vector<8x32xf32>
    %160 = arith.addf %159, %148 : vector<8x32xf32>
    %161 = math.tanh %160 : vector<8x32xf32>
    %162 = arith.subf %161, %146 : vector<8x32xf32>
    %163 = arith.mulf %157, %162 : vector<8x32xf32>
    %164 = arith.addf %146, %163 : vector<8x32xf32>
    %165 = tpu.concatenate %146, %139, %164, %157 in 1 : vector<8x32xf32>, vector<8x32xf32>, vector<8x32xf32>, vector<8x32xf32> -> vector<8x128xf32>
    %c24 = arith.constant 24 : index
    %c0_61 = arith.constant 0 : index
    %166 = vector.load %arg9[%c24, %c0_61] : memref<40x128xf32, #tpu.memory_space<vmem>>, vector<8x128xf32>
    tpu.vector_store %arg9[%c24, %c0_61], %165 {strides = array<i32>} : memref<40x128xf32, #tpu.memory_space<vmem>>, vector<8x128xf32>,
    %c0_62 = arith.constant 0 : index
    %c0_63 = arith.constant 0 : index
    %167 = vector.load %arg7[%c0_62, %c0_63] : memref<32x5xf32, #tpu.memory_space<vmem>>, vector<32x5xf32>
    %cst_64 = arith.constant dense<0.000000e+00> : vector<8x5xf32>
    %168 = tpu.matmul %164, %167, %cst_64 {dimension_numbers = #tpu.dot_dimension_numbers<[1], [0], [0], [1], [0, 0, 1, 1], [], []>} : vector<8x32xf32>, vector<32x5xf32>, vector<8x5xf32> -> vector<8x5xf32>
    %c0_65 = arith.constant 0 : index
    %c0_66 = arith.constant 0 : index
    %169 = vector.load %arg8[%c0_65, %c0_66] : memref<1x5xf32, #tpu.memory_space<vmem>>, vector<1x5xf32>
    %170 = vector.broadcast %169 : vector<1x5xf32> to vector<8x5xf32>
    %171 = arith.addf %168, %170 : vector<8x5xf32>
    %cst_67 = arith.constant 0.000000e+00 : f32
    %172 = vector.broadcast %cst_67 : f32 to vector<8x123xf32>
    %173 = tpu.concatenate %171, %172 in 1 : vector<8x5xf32>, vector<8x123xf32> -> vector<8x128xf32>
    %c32 = arith.constant 32 : index
    %c0_68 = arith.constant 0 : index
    %174 = vector.load %arg9[%c32, %c0_68] : memref<40x128xf32, #tpu.memory_space<vmem>>, vector<8x128xf32>
    tpu.vector_store %arg9[%c32, %c0_68], %173 {strides = array<i32>} : memref<40x128xf32, #tpu.memory_space<vmem>>, vector<8x128xf32>,
    return
  }
}

</mosaic_0001>

<bundles_post_ra>
// kernel: gru_forward_decode_prepared.1
= control target key start
LH: loop header
LB: loop body
LE: loop exit
PB: predicated region body
PF: predicated region fallthrough
CT: control target
= control target key end

     0   :  { %vm70_vm0 = vcmask 1043456   ;;  %vm45_vm1 = vcmask 31744   ;;  %v785_v6 = vmov 0.0   ;;  %vm172_vm2 = vcmask 261120   ;;  %s788_s14 = smov 64   ;;  %s1114_s5 = inlined_call_operand.vmem [shape: f32[32,32], index: 5, kind: input, shape index: {}]   ;;  %s1115_s1 = inlined_call_operand.vmem [shape: f32[4,32], index: 1, kind: input, shape index: {}]   ;;  %s1116_s0 = inlined_call_operand.vmem [shape: f32[64,4], index: 0, kind: input, shape index: {}]   ;;  %s1117_s3 = inlined_call_operand.vmem [shape: f32[1,32], index: 3, kind: input, shape index: {}]   ;;  %s1118_s6 = inlined_call_operand.vmem [shape: f32[32,32], index: 6, kind: input, shape index: {}]   ;;  %s1119_s2 = inlined_call_operand.vmem [shape: f32[4,32], index: 2, kind: input, shape index: {}]   ;;  %s1120_s4 = inlined_call_operand.vmem [shape: f32[1,32], index: 4, kind: input, shape index: {}]   ;;  %s1121_s9 = inlined_call_operand.vmem [shape: f32[40,128], index: 9, kind: output, shape index: {}]   ;;  %s1122_s7 = inlined_call_operand.vmem [shape: f32[32,5], index: 7, kind: input, shape index: {}]   ;;  %s1123_s8 = inlined_call_operand.vmem [shape: f32[1,5], index: 8, kind: input, shape index: {}]  }
   0x1   :  { %v842_v0 = vld [vmem:[%s1114_s5 + $0x18] sm:$0xff]  ;;  %v847_v1 = vld [vmem:[%s1114_s5 + $0x10] sm:$0xff]  ;;  %v40_v2 = vld [vmem:[%s1115_s1] sm:$0xf]  ;;  %vm295_vm3 = vcmask 523264   ;;  %vm297_vm4 = vcmask 785408  }
   0x2   :  { %188 = vmatpush.msra.mxu2 %v842_v0  ;;  %v32_v3 = vld [vmem:[%s1116_s0] sm:$0xff]  ;;  %v859_v4 = vld [vmem:[%s1114_s5 + $0x8] sm:$0xff]  ;;  %712 = vmatpush.msk.msra.mxu0 %vm70_vm0, %v40_v2  ;;  %v882_v7 = vld [vmem:[%s1118_s6 + $0x18] sm:$0xff]  ;;  %vm705_vm5 = vcmask 39936  }
   0x3   :  { %713 = vmatmul.msk.f32.vlgmr.msra.gmra.mxu0 %vm45_vm1, %v32_v3  ;;  %v867_v5 = vld [vmem:[%s1114_s5] sm:$0xff]  ;;  %216 = vmatpush.msra.mxu3 %v882_v7  ;;  %v888_v8 = vld [vmem:[%s1118_s6 + $0x10] sm:$0xff]  ;;  %v894_v9 = vld [vmem:[%s1118_s6 + $0x8] sm:$0xff] }
   0x4   :  { %189 = vmatpush.msra.mxu2 %v847_v1  ;;  %v900_v10 = vld [vmem:[%s1118_s6] sm:$0xff]  ;;  %v33_v22 = vld [vmem:[%s1116_s0 + $0x8] sm:$0xff]  ;;  %v34_v39 = vld [vmem:[%s1116_s0 + $0x10] sm:$0xff] }
   0x5   :  { %217 = vmatpush.msra.mxu3 %v888_v8  ;;  %v115_v11 = vld [vmem:[%s1119_s2] sm:$0xf]  ;;  %s786_s2 = smov 32   ;;  %v35_v63 = vld [vmem:[%s1116_s0 + $0x18] sm:$0xff] }
   0x6   :  { %190 = vmatpush.msra.mxu2 %v859_v4  ;;  %721 = vmatpush.msk.msra.mxu1 %vm70_vm0, %v115_v11  ;;  %v915_v12 = vld [vmem:[%s1117_s3] ss:$0 sm:$0xff] }
   0x7   :  { %218 = vmatpush.msra.mxu3 %v894_v9  ;;  %722 = vmatmul.msk.f32.vlgmr.msra.gmra.mxu1 %vm45_vm1, %v32_v3  ;;  %v932_v23 = vld [vmem:[%s1120_s4] ss:$0 sm:$0xff]  ;;  %s787_s4 = smov 96  }
   0x8   :  { %191 = vmatpush.msra.mxu2 %v867_v5 }
   0x9   :  { %192 = vmatmul.f32.vlgmr.msra.gmra.mxu2 %v785_v6  ;;  %219 = vmatpush.msra.mxu3 %v900_v10 }
   0xa   :  { %242 = vmatpush.msrb.mxu2 %v842_v0 }
   0xb   :  { %270 = vmatpush.msrb.mxu3 %v882_v7  ;;  %714 = vmatmul.msk.f32.gmra.mxu0 %vm45_vm1, %v33_v22 }
   0xc   :  { %243 = vmatpush.msrb.mxu2 %v847_v1 }
   0xd   :  { %271 = vmatpush.msrb.mxu3 %v888_v8 }
   0xe   :  { %244 = vmatpush.msrb.mxu2 %v859_v4 }
   0xf   :  { %272 = vmatpush.msrb.mxu3 %v894_v9  ;;  %723 = vmatmul.msk.f32.gmra.mxu1 %vm45_vm1, %v33_v22 }
  0x10   :  { %245 = vmatpush.msrb.mxu2 %v867_v5 }
  0x11   :  { %273 = vmatpush.msrb.mxu3 %v900_v10 }
  0x12   :  { %314 = vmatpush.msra.mxu2 %v842_v0 }
  0x13   :  { %715 = vmatmul.msk.f32.gmra.mxu0 %vm45_vm1, %v34_v39 }
  0x14   :  { %315 = vmatpush.msra.mxu2 %v847_v1 }
  0x16   :  { %316 = vmatpush.msra.mxu2 %v859_v4 }
  0x17   :  { %724 = vmatmul.msk.f32.gmra.mxu1 %vm45_vm1, %v34_v39 }
  0x18   :  { %317 = vmatpush.msra.mxu2 %v867_v5 }
  0x1b   :  { %716 = vmatmul.msk.f32.gmra.mxu0 %vm45_vm1, %v35_v63 }
  0x1f   :  { %725 = vmatmul.msk.f32.gmra.mxu1 %vm45_vm1, %v35_v63 }
  0x80   :  { %v91_v13 = vpop.f32.mrf.mxu0 }
  0x81   :  { %v92_v14 = vadd.f32 %v915_v12, %v91_v13 }
  0x84   :  { %v140_v24 = vpop.f32.mrf.mxu1 }
  0x85   :  { %v141_v25 = vadd.f32 %v932_v23, %v140_v24 }
  0x88   :  { %v94_v30 = vpop.f32.mrf.mxu0 }
  0x89   :  { %v95_v31 = vadd.f32 %v915_v12, %v94_v30 }
  0x8c   :  { %v193_v15 = vpop.f32.mrf.mxu2  ;;  %v143_v40 = vpop.f32.mrf.mxu1 }
  0x8d   :  { %v194_v16 = vadd.f32 %v193_v15, %v92_v14  ;;  %v144_v41 = vadd.f32 %v932_v23, %v143_v40 }
  0x8f   :  { %v196_v17 = vmul.f32 0.5, %v194_v16 }
  0x90   :  { %v97_v54 = vpop.f32.mrf.mxu0 }
  0x91   :  { %753 = vtanh.f32 %v196_v17  ;;  %v98_v55 = vadd.f32 %v915_v12, %v97_v54 }
  0x94   :  { %v146_v2 = vpop.f32.mrf.mxu1 }
  0x95   :  { %v147_v3 = vadd.f32 %v932_v23, %v146_v2 }
  0x97   :  { %v754_v18 = vpop.eup %753 }
  0x98   :  { %v198_v19 = vmul.f32 0.5, %v754_v18  ;;  %v100_v17 = vpop.f32.mrf.mxu0 }
  0x99   :  { %v101_v18 = vadd.f32 %v915_v12, %v100_v17 }
  0x9a   :  { %v199_v20 = vadd.f32 0.5, %v198_v19 }
  0x9c   :  { %283 = vrot.lane.b32.xlu0 %v199_v20, %s786_s2  ;;  %v200_v21 = vmul.f32 0.0, %v199_v20 }
  0x9e   :  { %730 = vmatmul.msk.f32.vlgmr.msra.gmra.mxu3 %vm172_vm2, %v200_v21 }
  0x9f   :  { %342 = vmatpush.msra.mxu3 %v882_v7 }
  0xa1   :  { %343 = vmatpush.msra.mxu3 %v888_v8 }
  0xa3   :  { %344 = vmatpush.msra.mxu3 %v894_v9 }
  0xa5   :  { %345 = vmatpush.msra.mxu3 %v900_v10 }
 0x10e   :  { %v284_v49 = vpop.permute.xlu0 %283 }
 0x121   :  { %v221_v26 = vpop.f32.mrf.mxu3 }
 0x122   :  { %v222_v27 = vadd.f32 %v221_v26, %v141_v25 }
 0x124   :  { %755 = vtanh.f32 %v222_v27  ;;  %v36_v27 = vld [vmem:[%s1116_s0 + $0x20] sm:$0xff] }
 0x125   :  { %717 = vmatmul.msk.f32.gmra.mxu0 %vm45_vm1, %v36_v27  ;;  %726 = vmatmul.msk.f32.gmra.mxu1 %vm45_vm1, %v36_v27 }
 0x12a   :  { %v756_v28 = vpop.eup %755 }
 0x12b   :  { %v225_v29 = vmul.f32 %v756_v28, %v199_v20  ;;  %v149_v28 = vpop.f32.mrf.mxu1 }
 0x12d   :  { %731 = vmatmul.msk.f32.vlgmr.msrb.gmra.mxu2 %vm172_vm2, %v225_v29  ;;  %v294_v50 = vsel %vm172_vm2, %v225_v29, %v284_v49 }
 0x12e   :  { %369 = vmatpush.msrb.mxu2 %v842_v0 }
 0x130   :  { %370 = vmatpush.msrb.mxu2 %v847_v1 }
 0x132   :  { %371 = vmatpush.msrb.mxu2 %v859_v4 }
 0x134   :  { %372 = vmatpush.msrb.mxu2 %v867_v5 }
 0x1b0   :  { %v247_v32 = vpop.f32.mrf.mxu2 }
 0x1b1   :  { %v248_v33 = vadd.f32 %v247_v32, %v95_v31 }
 0x1b3   :  { %v250_v34 = vmul.f32 0.5, %v248_v33 }
 0x1b5   :  { %757 = vtanh.f32 %v250_v34 }
 0x1bb   :  { %v758_v35 = vpop.eup %757 }
 0x1bc   :  { %v252_v36 = vmul.f32 0.5, %v758_v35 }
 0x1be   :  { %v253_v37 = vadd.f32 0.5, %v252_v36  ;;  %v103_v36 = vpop.f32.mrf.mxu0 }
 0x1c0   :  { %291 = vrot.lane.b32.xlu2 %v253_v37, %s787_s4  ;;  %v254_v38 = vmul.f32 %v253_v37, %v225_v29 }
 0x1c2   :  { %732 = vmatmul.msk.f32.vlgmr.msrb.gmra.mxu3 %vm172_vm2, %v254_v38 }
 0x1c3   :  { %397 = vmatpush.msrb.mxu3 %v882_v7 }
 0x1c5   :  { %398 = vmatpush.msrb.mxu3 %v888_v8 }
 0x1c7   :  { %399 = vmatpush.msrb.mxu3 %v894_v9 }
 0x1c9   :  { %400 = vmatpush.msrb.mxu3 %v900_v10 }
 0x21a   :  { %v292_v48 = vpop.permute.xlu2 %291 }
 0x245   :  { %v275_v42 = vpop.f32.mrf.mxu3 }
 0x246   :  { %v276_v43 = vadd.f32 %v275_v42, %v144_v41 }
 0x248   :  { %759 = vtanh.f32 %v276_v43 }
 0x24e   :  { %v760_v44 = vpop.eup %759 }
 0x24f   :  { %v279_v45 = vsub.f32 %v760_v44, %v225_v29 }
 0x251   :  { %v280_v46 = vmul.f32 %v279_v45, %v253_v37  ;;  %v104_v37 = vadd.f32 %v915_v12, %v103_v36  ;;  %v37_v45 = vld [vmem:[%s1116_s0 + $0x28] sm:$0xff] }
 0x252   :  { %718 = vmatmul.msk.f32.gmra.mxu0 %vm45_vm1, %v37_v45  ;;  %727 = vmatmul.msk.f32.gmra.mxu1 %vm45_vm1, %v37_v45  ;;  %v677_v45 = vld [vmem:[%s1122_s7 + $0x10] sm:$0xff] }
 0x253   :  { %v281_v47 = vadd.f32 %v280_v46, %v225_v29  ;;  %v150_v29 = vadd.f32 %v932_v23, %v149_v28  ;;  %v152_v46 = vpop.f32.mrf.mxu1 }
 0x255   :  { %287 = vrot.lane.b32.xlu2 %v281_v47, %s788_s14  ;;  %733 = vmatmul.msk.f32.vlgmr.msra.gmra.mxu2 %vm172_vm2, %v281_v47 }
 0x256   :  { %439 = vmatpush.msra.mxu2 %v842_v0 }
 0x258   :  { %440 = vmatpush.msra.mxu2 %v847_v1 }
 0x25a   :  { %441 = vmatpush.msra.mxu2 %v859_v4 }
 0x25c   :  { %442 = vmatpush.msra.mxu2 %v867_v5 }
 0x2af   :  { %v288_v51 = vpop.permute.xlu2 %287 }
 0x2b0   :  { %v296_v52 = vsel %vm295_vm3, %v294_v50, %v288_v51 }
 0x2b1   :  { %v298_v53 = vsel %vm297_vm4, %v296_v52, %v292_v48 }
 0x2b2   :  { %299 = vst [vmem:[%s1121_s9] sm:$0xff] %v298_v53 }
 0x2cf   :  { %v106_v54 = vpop.f32.mrf.mxu0 }
 0x2d8   :  { %v319_v56 = vpop.f32.mrf.mxu2 }
 0x2d9   :  { %v320_v57 = vadd.f32 %v319_v56, %v98_v55  ;;  %v107_v55 = vadd.f32 %v915_v12, %v106_v54 }
 0x2db   :  { %v322_v58 = vmul.f32 0.5, %v320_v57 }
 0x2dd   :  { %761 = vtanh.f32 %v322_v58 }
 0x2e3   :  { %v762_v59 = vpop.eup %761 }
 0x2e4   :  { %v324_v60 = vmul.f32 0.5, %v762_v59 }
 0x2e6   :  { %v325_v61 = vadd.f32 0.5, %v324_v60 }
 0x2e8   :  { %v326_v62 = vmul.f32 %v325_v61, %v281_v47  ;;  %410 = vrot.lane.b32.xlu0 %v325_v61, %s786_s2 }
 0x2ea   :  { %734 = vmatmul.msk.f32.vlgmr.msra.gmra.mxu3 %vm172_vm2, %v326_v62 }
 0x2eb   :  { %467 = vmatpush.msra.mxu3 %v882_v7 }
 0x2ed   :  { %468 = vmatpush.msra.mxu3 %v888_v8 }
 0x2ef   :  { %469 = vmatpush.msra.mxu3 %v894_v9 }
 0x2f1   :  { %470 = vmatpush.msra.mxu3 %v900_v10 }
 0x35a   :  { %v411_v2 = vpop.permute.xlu0 %410 }
 0x36d   :  { %v347_v6 = vpop.f32.mrf.mxu3 }
 0x36e   :  { %v348_v11 = vadd.f32 %v347_v6, %v147_v3 }
 0x370   :  { %763 = vtanh.f32 %v348_v11 }
 0x376   :  { %v764_v13 = vpop.eup %763 }
 0x377   :  { %v351_v14 = vsub.f32 %v764_v13, %v281_v47 }
 0x379   :  { %v352_v15 = vmul.f32 %v351_v14, %v325_v61 }
 0x37b   :  { %v978_v16 = vadd.f32 %v352_v15, %v281_v47  ;;  %v153_v47 = vadd.f32 %v932_v23, %v152_v46  ;;  %v675_v46 = vld [vmem:[%s1122_s7] sm:$0xff] }
 0x37d   :  { %735 = vmatmul.msk.f32.vlgmr.msrb.gmra.mxu2 %vm172_vm2, %v978_v16  ;;  %v421_v11 = vsel %vm172_vm2, %v978_v16, %v411_v2 }
 0x37e   :  { %494 = vmatpush.msrb.mxu2 %v842_v0 }
 0x380   :  { %495 = vmatpush.msrb.mxu2 %v847_v1 }
 0x382   :  { %496 = vmatpush.msrb.mxu2 %v859_v4 }
 0x384   :  { %497 = vmatpush.msrb.mxu2 %v867_v5 }
 0x400   :  { %v374_v19 = vpop.f32.mrf.mxu2 }
 0x401   :  { %v375_v20 = vadd.f32 %v374_v19, %v101_v18 }
 0x403   :  { %v377_v21 = vmul.f32 0.5, %v375_v20 }
 0x405   :  { %765 = vtanh.f32 %v377_v21 }
 0x40b   :  { %v766_v22 = vpop.eup %765 }
 0x40c   :  { %v379_v24 = vmul.f32 0.5, %v766_v22 }
 0x40e   :  { %v987_v25 = vadd.f32 0.5, %v379_v24 }
 0x410   :  { %v381_v26 = vmul.f32 %v987_v25, %v978_v16 }
 0x412   :  { %736 = vmatmul.msk.f32.vlgmr.msrb.gmra.mxu3 %vm172_vm2, %v381_v26  ;;  %v39_v26 = vld [vmem:[%s1116_s0 + $0x38] sm:$0xff] }
 0x413   :  { %522 = vmatpush.msrb.mxu3 %v882_v7 }
 0x415   :  { %523 = vmatpush.msrb.mxu3 %v888_v8 }
 0x417   :  { %524 = vmatpush.msrb.mxu3 %v894_v9 }
 0x419   :  { %525 = vmatpush.msrb.mxu3 %v900_v10 }
 0x495   :  { %v402_v30 = vpop.f32.mrf.mxu3 }
 0x496   :  { %v403_v31 = vadd.f32 %v402_v30, %v150_v29 }
 0x498   :  { %767 = vtanh.f32 %v403_v31 }
 0x49e   :  { %v768_v32 = vpop.eup %767 }
 0x49f   :  { %v406_v33 = vsub.f32 %v768_v32, %v978_v16 }
 0x4a1   :  { %v407_v34 = vmul.f32 %v406_v33, %v987_v25 }
 0x4a3   :  { %v408_v35 = vadd.f32 %v407_v34, %v978_v16 }
 0x4a5   :  { %414 = vrot.lane.b32.xlu2 %v408_v35, %s788_s14  ;;  %737 = vmatmul.msk.f32.vlgmr.msra.gmra.mxu2 %vm172_vm2, %v408_v35 }
 0x4a6   :  { %564 = vmatpush.msra.mxu2 %v842_v0 }
 0x4a8   :  { %565 = vmatpush.msra.mxu2 %v847_v1 }
 0x4aa   :  { %566 = vmatpush.msra.mxu2 %v859_v4 }
 0x4ac   :  { %567 = vmatpush.msra.mxu2 %v867_v5 }
 0x4ff   :  { %v415_v6 = vpop.permute.xlu2 %414 }
 0x500   :  { %v422_v13 = vsel %vm295_vm3, %v421_v11, %v415_v6 }
 0x528   :  { %v444_v38 = vpop.f32.mrf.mxu2 }
 0x529   :  { %v445_v39 = vadd.f32 %v444_v38, %v104_v37 }
 0x52b   :  { %v447_v40 = vmul.f32 0.5, %v445_v39 }
 0x52d   :  { %769 = vtanh.f32 %v447_v40 }
 0x533   :  { %v770_v41 = vpop.eup %769 }
 0x534   :  { %v449_v42 = vmul.f32 0.5, %v770_v41 }
 0x536   :  { %v450_v43 = vadd.f32 0.5, %v449_v42 }
 0x538   :  { %v451_v44 = vmul.f32 %v450_v43, %v408_v35  ;;  %535 = vrot.lane.b32.xlu1 %v450_v43, %s786_s2 }
 0x53a   :  { %738 = vmatmul.msk.f32.vlgmr.msra.gmra.mxu3 %vm172_vm2, %v451_v44 }
 0x53b   :  { %592 = vmatpush.msra.mxu3 %v882_v7 }
 0x53d   :  { %593 = vmatpush.msra.mxu3 %v888_v8 }
 0x53f   :  { %594 = vmatpush.msra.mxu3 %v894_v9 }
 0x541   :  { %595 = vmatpush.msra.mxu3 %v900_v10 }
 0x5bd   :  { %v472_v48 = vpop.f32.mrf.mxu3 }
 0x5be   :  { %v473_v49 = vadd.f32 %v472_v48, %v153_v47 }
 0x5c0   :  { %771 = vtanh.f32 %v473_v49 }
 0x5c6   :  { %v772_v50 = vpop.eup %771 }
 0x5c7   :  { %v476_v51 = vsub.f32 %v772_v50, %v408_v35 }
 0x5c9   :  { %v477_v52 = vmul.f32 %v476_v51, %v450_v43 }
 0x5cb   :  { %v1024_v53 = vadd.f32 %v477_v52, %v408_v35  ;;  %v678_v35 = vld [vmem:[%s1122_s7 + $0x18] sm:$0xff] }
 0x5cc   :  { %697 = vmatpush.msrb.mxu0 %v678_v35 }
 0x5cd   :  { %739 = vmatmul.msk.f32.vlgmr.msrb.gmra.mxu2 %vm172_vm2, %v1024_v53 }
 0x5ce   :  { %619 = vmatpush.msrb.mxu2 %v842_v0  ;;  %698 = vmatpush.msrb.mxu0 %v677_v45 }
 0x5d0   :  { %620 = vmatpush.msrb.mxu2 %v847_v1  ;;  %v38_v1 = vld [vmem:[%s1116_s0 + $0x30] sm:$0xff] }
 0x5d1   :  { %719 = vmatmul.msk.f32.gmra.mxu0 %vm45_vm1, %v38_v1  ;;  %728 = vmatmul.msk.f32.gmra.mxu1 %vm45_vm1, %v38_v1 }
 0x5d2   :  { %621 = vmatpush.msrb.mxu2 %v859_v4  ;;  %v155_v4 = vpop.f32.mrf.mxu1 }
 0x5d4   :  { %622 = vmatpush.msrb.mxu2 %v867_v5  ;;  %v156_v5 = vadd.f32 %v932_v23, %v155_v4 }
 0x5d9   :  { %720 = vmatmul.msk.f32.gmra.mxu0 %vm45_vm1, %v39_v26  ;;  %729 = vmatmul.msk.f32.gmra.mxu1 %vm45_vm1, %v39_v26 }
 0x64e   :  { %v109_v17 = vpop.f32.mrf.mxu0  ;;  %v158_v27 = vpop.f32.mrf.mxu1 }
 0x64f   :  { %v110_v18 = vadd.f32 %v915_v12, %v109_v17  ;;  %v159_v28 = vadd.f32 %v932_v23, %v158_v27 }
 0x650   :  { %v499_v56 = vpop.f32.mrf.mxu2 }
 0x651   :  { %v500_v57 = vadd.f32 %v499_v56, %v107_v55  ;;  %v536_v56 = vpop.permute.xlu1 %535 }
 0x652   :  { %v546_v1 = vsel %vm172_vm2, %v1024_v53, %v536_v56 }
 0x653   :  { %v502_v58 = vmul.f32 0.5, %v500_v57 }
 0x655   :  { %773 = vtanh.f32 %v502_v58 }
 0x656   :  { %v112_v36 = vpop.f32.mrf.mxu0  ;;  %v161_v47 = vpop.f32.mrf.mxu1 }
 0x657   :  { %v113_v37 = vadd.f32 %v915_v12, %v112_v36  ;;  %v676_v12 = vld [vmem:[%s1122_s7 + $0x8] sm:$0xff]  ;;  %v162_v48 = vadd.f32 %v932_v23, %v161_v47 }
 0x658   :  { %699 = vmatpush.msrb.mxu0 %v676_v12 }
 0x65a   :  { %700 = vmatpush.msrb.mxu0 %v675_v46 }
 0x65b   :  { %v774_v59 = vpop.eup %773 }
 0x65c   :  { %v504_v60 = vmul.f32 0.5, %v774_v59 }
 0x65e   :  { %v1033_v61 = vadd.f32 0.5, %v504_v60 }
 0x660   :  { %v506_v0 = vmul.f32 %v1033_v61, %v1024_v53 }
 0x662   :  { %740 = vmatmul.msk.f32.vlgmr.msrb.gmra.mxu3 %vm172_vm2, %v506_v0 }
 0x663   :  { %647 = vmatpush.msrb.mxu3 %v882_v7 }
 0x665   :  { %648 = vmatpush.msrb.mxu3 %v888_v8 }
 0x667   :  { %649 = vmatpush.msrb.mxu3 %v894_v9 }
 0x669   :  { %650 = vmatpush.msrb.mxu3 %v900_v10 }
 0x6e5   :  { %v527_v62 = vpop.f32.mrf.mxu3 }
 0x6e6   :  { %v528_v63 = vadd.f32 %v527_v62, %v156_v5  ;;  %v752_v5 = vld [vmem:[%s1123_s8] ss:$0 sm:$0xff] }
 0x6e8   :  { %775 = vtanh.f32 %v528_v63 }
 0x6ee   :  { %v776_v7 = vpop.eup %775 }
 0x6ef   :  { %v531_v8 = vsub.f32 %v776_v7, %v1024_v53 }
 0x6f1   :  { %v532_v9 = vmul.f32 %v531_v8, %v1033_v61 }
 0x6f3   :  { %v533_v10 = vadd.f32 %v532_v9, %v1024_v53 }
 0x6f5   :  { %539 = vrot.lane.b32.xlu0 %v533_v10, %s788_s14  ;;  %741 = vmatmul.msk.f32.vlgmr.msra.gmra.mxu2 %vm172_vm2, %v533_v10 }
 0x6fd   :  { %418 = vrot.lane.b32.xlu0 %v987_v25, %s787_s4 }
 0x767   :  { %v1055_v3 = vpop.permute.xlu0 %539 }
 0x76f   :  { %v419_v14 = vpop.permute.xlu0 %418 }
 0x770   :  { %v423_v15 = vsel %vm297_vm4, %v422_v13, %v419_v14 }
 0x771   :  { %424 = vst [vmem:[%s1121_s9 + $0x8] sm:$0xff] %v423_v15 }
 0x778   :  { %v569_v19 = vpop.f32.mrf.mxu2 }
 0x779   :  { %v570_v20 = vadd.f32 %v569_v19, %v110_v18 }
 0x77b   :  { %v572_v21 = vmul.f32 0.5, %v570_v20 }
 0x77d   :  { %777 = vtanh.f32 %v572_v21 }
 0x783   :  { %v778_v22 = vpop.eup %777 }
 0x784   :  { %v574_v24 = vmul.f32 0.5, %v778_v22 }
 0x786   :  { %v575_v25 = vadd.f32 0.5, %v574_v24 }
 0x788   :  { %v576_v16 = vmul.f32 %v575_v25, %v533_v10  ;;  %660 = vrot.lane.b32.xlu1 %v575_v25, %s786_s2 }
 0x78a   :  { %742 = vmatmul.msk.f32.vlgmr.msra.gmra.mxu3 %vm172_vm2, %v576_v16 }
 0x7fa   :  { %v661_v57 = vpop.permute.xlu1 %660 }
 0x80d   :  { %v597_v29 = vpop.f32.mrf.mxu3 }
 0x80e   :  { %v598_v30 = vadd.f32 %v597_v29, %v159_v28 }
 0x810   :  { %779 = vtanh.f32 %v598_v30 }
 0x816   :  { %v780_v31 = vpop.eup %779 }
 0x817   :  { %v601_v32 = vsub.f32 %v780_v31, %v533_v10 }
 0x819   :  { %v602_v33 = vmul.f32 %v601_v32, %v575_v25 }
 0x81b   :  { %v603_v34 = vadd.f32 %v602_v33, %v533_v10 }
 0x81d   :  { %743 = vmatmul.msk.f32.vlgmr.msrb.gmra.mxu2 %vm172_vm2, %v603_v34  ;;  %v671_v58 = vsel %vm172_vm2, %v603_v34, %v661_v57 }
 0x8a0   :  { %v624_v38 = vpop.f32.mrf.mxu2 }
 0x8a1   :  { %v625_v39 = vadd.f32 %v624_v38, %v113_v37 }
 0x8a3   :  { %v627_v40 = vmul.f32 0.5, %v625_v39 }
 0x8a5   :  { %781 = vtanh.f32 %v627_v40 }
 0x8ab   :  { %v782_v41 = vpop.eup %781 }
 0x8ac   :  { %v629_v42 = vmul.f32 0.5, %v782_v41 }
 0x8ae   :  { %v630_v43 = vadd.f32 0.5, %v629_v42 }
 0x8b0   :  { %v631_v44 = vmul.f32 %v630_v43, %v603_v34  ;;  %668 = vrot.lane.b32.xlu2 %v630_v43, %s787_s4 }
 0x8b2   :  { %744 = vmatmul.msk.f32.vlgmr.msrb.gmra.mxu3 %vm172_vm2, %v631_v44 }
 0x90a   :  { %v669_v23 = vpop.permute.xlu2 %668 }
 0x935   :  { %v652_v49 = vpop.f32.mrf.mxu3 }
 0x936   :  { %v653_v50 = vadd.f32 %v652_v49, %v162_v48 }
 0x938   :  { %783 = vtanh.f32 %v653_v50 }
 0x93e   :  { %v784_v51 = vpop.eup %783 }
 0x93f   :  { %v656_v52 = vsub.f32 %v784_v51, %v603_v34 }
 0x941   :  { %v657_v54 = vmul.f32 %v656_v52, %v630_v43 }
 0x943   :  { %v658_v55 = vadd.f32 %v657_v54, %v603_v34 }
 0x945   :  { %664 = vrot.lane.b32.xlu1 %v658_v55, %s788_s14  ;;  %745 = vmatmul.msk.f32.vlgmr.msrb.gmra.mxu0 %vm172_vm2, %v658_v55 }
 0x94d   :  { %543 = vrot.lane.b32.xlu1 %v1033_v61, %s787_s4  ;;  %v547_v61 = vsel %vm295_vm3, %v546_v1, %v1055_v3 }
 0x9b7   :  { %v665_v59 = vpop.permute.xlu1 %664 }
 0x9b8   :  { %v672_v60 = vsel %vm295_vm3, %v671_v58, %v665_v59 }
 0x9b9   :  { %v673_v0 = vsel %vm297_vm4, %v672_v60, %v669_v23 }
 0x9ba   :  { %674 = vst [vmem:[%s1121_s9 + $0x18] sm:$0xff] %v673_v0 }
 0x9bf   :  { %v544_v4 = vpop.permute.xlu1 %543 }
 0x9c0   :  { %v548_v62 = vsel %vm297_vm4, %v547_v61, %v544_v4 }
 0x9c1   :  { %549 = vst [vmem:[%s1121_s9 + $0x10] sm:$0xff] %v548_v62 }
 0x9c2   :  { %v702_v63 = vpop.f32.mrf.mxu0 }
 0x9c3   :  { %v703_v7 = vadd.f32 %v752_v5, %v702_v63 }
 0x9c5   :  { %v706_v8 = vsel %vm705_vm5, %v703_v7, 0.0 }
 0x9c6   :  { %707 = vst [vmem:[%s1121_s9 + $0x20] sm:$0xff] %v706_v8 }

</bundles_post_ra>
